<compile_context>
chip_gen: v7x
topology: tpu7x:2x2x1
jax: 0.10.0
libtpu: 0.0.40
codegen_flags: <defaults>
</compile_context>

<pallas_src>
import jax
import jax.numpy as jnp
from jax import lax
from jax.experimental import pallas as pl
from jax.experimental.pallas import tpu as pltpu


def _sobelxy_kernel(x_ref, halo_ref, o_ref):
    # x_ref:    (1, 3, TH, W)  image tile (input dtype)
    # halo_ref: (1, 1, 6, W)   boundary rows [r_top, r_bot, g_top, g_bot, b_top, b_bot]
    # o_ref:    (1, 1, TH, W)  output tile (input dtype)
    TH, W = x_ref.shape[2], x_ref.shape[3]
    f32 = jnp.float32

    # RGB -> grayscale (fused; math in f32 regardless of I/O dtype).
    gray = (0.299 * x_ref[0, 0].astype(f32)
            + 0.587 * x_ref[0, 1].astype(f32)
            + 0.114 * x_ref[0, 2].astype(f32))                       # (TH, W)

    h = halo_ref[0, 0].astype(f32)                                    # (6, W)
    gray_hal = 0.299 * h[0:2] + 0.587 * h[2:4] + 0.114 * h[4:6]       # (2, W): [above, below]

    # ---- Horizontal (lane) pass: zero padding at the left/right image edge. ----
    col = lax.broadcasted_iota(jnp.int32, (1, W), 1)
    first_col = col == 0
    last_col = col == W - 1

    def hpass(a):
        a_l = jnp.where(first_col, 0.0, pltpu.roll(a, 1, axis=1))       # a[:, j-1]
        a_r = jnp.where(last_col, 0.0, pltpu.roll(a, W - 1, axis=1))    # a[:, j+1]
        return a_r - a_l, a_l + 2.0 * a + a_r                           # dx, sh

    dx, sh = hpass(gray)          # (TH, W)
    dxh, shh = hpass(gray_hal)    # (2, W)

    # ---- Vertical (sublane) pass: tile-boundary rows come from the halo input. ----
    row = lax.broadcasted_iota(jnp.int32, (TH, 1), 0)
    is_top = row == 0
    is_bot = row == TH - 1

    dx_u = jnp.where(is_top, dxh[0:1], pltpu.roll(dx, 1, axis=0))       # dx[i-1, :]
    dx_d = jnp.where(is_bot, dxh[1:2], pltpu.roll(dx, TH - 1, axis=0))  # dx[i+1, :]
    sh_u = jnp.where(is_top, shh[0:1], pltpu.roll(sh, 1, axis=0))       # sh[i-1, :]
    sh_d = jnp.where(is_bot, shh[1:2], pltpu.roll(sh, TH - 1, axis=0))  # sh[i+1, :]

    sobelx = dx_u + 2.0 * dx + dx_d   # == F.conv2d(gray, kernelx, padding=1)
    sobely = sh_u - sh_d              # == F.conv2d(gray, kernely, padding=1)

    o_ref[0, 0] = (jnp.abs(sobelx) + jnp.abs(sobely)).astype(o_ref.dtype)


def sobelxy(x, tile_h=128):
    """Pallas equivalent of Sobelxy().forward(x); x: (B, 3, H, W) -> (B, 1, H, W).

    tile_h: H-tile height (multiple of 8).  Per-step VMEM ~= tile_h * W_pad *
    (3*bytes*2 in + bytes*2 out + ~24 f32 temps); shrink tile_h for very wide images
    so this stays within the 32 MiB scoped VMEM budget (v7x has only 64 MiB physical).
    """
    B, C, H, W = x.shape
    assert C == 3, "Sobelxy expects RGB input (C == 3)"
    dtype = x.dtype

    # Lane-dense width: pad W up to a multiple of 128 so output stores are unmasked vst.
    # Zero padding matches conv2d padding=1 semantics at the right image edge.
    W_pad = ((W + 127) // 128) * 128
    if W_pad != W:
        x = jnp.pad(x, ((0, 0), (0, 0), (0, 0), (0, W_pad - W)))

    # H tiling: whole image if it is small, otherwise tiles of tile_h rows.
    TH = H if H <= tile_h else tile_h
    assert TH == H or TH % 8 == 0, "tile_h must be a multiple of 8"
    nT = (H + TH - 1) // TH
    H_pad = nT * TH
    if H_pad != H:
        # Zero pad matches conv2d padding=1 at the bottom image edge; extra rows sliced off.
        x = jnp.pad(x, ((0, 0), (0, 0), (0, H_pad - H), (0, 0)))

    # Halo rows per tile (row above / row below each tile; zero outside the image).
    # Tiny side input (~2/TH of the image bytes) so the main blocks stay non-overlapping.
    zero_row = jnp.zeros((B, 3, 1, W_pad), dtype)
    top = jnp.concatenate(
        [zero_row, x[:, :, TH - 1:H_pad - 1:TH, :]], axis=2)            # (B, 3, nT, W_pad)
    bot = jnp.concatenate(
        [x[:, :, TH:H_pad:TH, :], zero_row], axis=2)                    # (B, 3, nT, W_pad)
    halo = jnp.stack([top, bot], axis=2).reshape(B, 6, nT, W_pad)       # [r_t,r_b,g_t,g_b,b_t,b_b]
    halo = jnp.transpose(halo, (0, 2, 1, 3))                            # (B, nT, 6, W_pad)

    out = pl.pallas_call(
        _sobelxy_kernel,
        out_shape=jax.ShapeDtypeStruct((B, 1, H_pad, W_pad), dtype),
        grid_spec=pltpu.PrefetchScalarGridSpec(
            num_scalar_prefetch=0,
            grid=(B, nT),
            in_specs=[
                pl.BlockSpec((1, 3, TH, W_pad), lambda b, t: (b, 0, t, 0)),
                pl.BlockSpec((1, 1, 6, W_pad), lambda b, t: (b, t, 0, 0)),
            ],
            out_specs=pl.BlockSpec((1, 1, TH, W_pad), lambda b, t: (b, 0, t, 0)),
        ),
        compiler_params=pltpu.CompilerParams(
            dimension_semantics=("parallel", "parallel"),
            vmem_limit_bytes=32 * 1024 * 1024,
        ),
    )(x, halo)

    if H_pad != H or W_pad != W:
        out = out[:, :, :H, :W]
    return out


def _reference(x):
    """Pure-JAX reference matching the PyTorch module (cross-correlation, zero padding)."""
    x = x.astype(jnp.float32)
    w = jnp.array([0.299, 0.587, 0.114], jnp.float32).reshape(1, 3, 1, 1)
    gray = jnp.sum(x * w, axis=1, keepdims=True)  # (B, 1, H, W)
    kx = jnp.array([[-1.0, 0.0, 1.0], [-2.0, 0.0, 2.0], [-1.0, 0.0, 1.0]],
                   jnp.float32).reshape(1, 1, 3, 3)
    ky = jnp.array([[1.0, 2.0, 1.0], [0.0, 0.0, 0.0], [-1.0, -2.0, -1.0]],
                   jnp.float32).reshape(1, 1, 3, 3)
    dn = ("NCHW", "OIHW", "NCHW")
    sx = jax.lax.conv_general_dilated(gray, kx, (1, 1), ((1, 1), (1, 1)),
                                      dimension_numbers=dn)
    sy = jax.lax.conv_general_dilated(gray, ky, (1, 1), ((1, 1), (1, 1)),
                                      dimension_numbers=dn)
    return jnp.abs(sx) + jnp.abs(sy)


if __name__ == "__main__":
    k0, k1, k2 = jax.random.split(jax.random.PRNGKey(0), 3)

    # 1) Aligned shapes, several H tiles (exercises the halo path), f32 I/O.
    x = jax.random.normal(k0, (2, 3, 64, 128), dtype=jnp.float32)
    out = jax.block_until_ready(sobelxy(x, tile_h=16))
    ref = _reference(x)
    assert out.shape == (2, 1, 64, 128), out.shape
    assert jnp.allclose(out, ref, rtol=1e-5, atol=1e-5), (
        float(jnp.max(jnp.abs(out - ref))))

    # 2) Unaligned H/W: wrapper pads to lane-dense W and a whole number of H tiles.
    x2 = jax.random.normal(k1, (1, 3, 20, 100), dtype=jnp.float32)
    out2 = jax.block_until_ready(sobelxy(x2, tile_h=16))
    ref2 = _reference(x2)
    assert out2.shape == (1, 1, 20, 100), out2.shape
    assert jnp.allclose(out2, ref2, rtol=1e-5, atol=1e-5), (
        float(jnp.max(jnp.abs(out2 - ref2))))

    # 3) bf16 streaming I/O (f32 math inside the kernel).
    x3 = jax.random.normal(k2, (2, 3, 32, 128), dtype=jnp.float32).astype(jnp.bfloat16)
    out3 = jax.block_until_ready(sobelxy(x3, tile_h=16))
    ref3 = _reference(x3)
    assert out3.dtype == jnp.bfloat16 and out3.shape == (2, 1, 32, 128)
    assert jnp.allclose(out3.astype(jnp.float32), ref3, rtol=2e-2, atol=2e-2), (
        float(jnp.max(jnp.abs(out3.astype(jnp.float32) - ref3))))

    print("KERNEL_OK")
</pallas_src>

<mosaic_0001>
module attributes {stable_mosaic.version = 11 : i64} {
  func.func @_sobelxy_kernel(%arg0: i32, %arg1: i32, %arg2: memref<1x3x16x128xf32, #tpu.memory_space<vmem>>, %arg3: memref<1x1x6x128xf32, #tpu.memory_space<vmem>>, %arg4: memref<1x1x16x128xf32, #tpu.memory_space<vmem>>) attributes {dimension_semantics = [#tpu.dimension_semantics<parallel>, #tpu.dimension_semantics<parallel>], iteration_bounds = array<i64: 2, 4>, scalar_prefetch = 0 : i64, scratch_operands = 0 : i64, tpu.core_type = #tpu.core_type<tc>, window_params = [{transform_indices = @transform_0, window_bounds = array<i64: 1, 3, 16, 128>}, {transform_indices = @transform_1, window_bounds = array<i64: 1, 1, 6, 128>}, {transform_indices = @transform_2, window_bounds = array<i64: 1, 1, 16, 128>}]} {
    %c0 = arith.constant 0 : index
    %c0_0 = arith.constant 0 : index
    %c0_1 = arith.constant 0 : index
    %c0_2 = arith.constant 0 : index
    %0 = vector.load %arg2[%c0, %c0_0, %c0_1, %c0_2] : memref<1x3x16x128xf32, #tpu.memory_space<vmem>>, vector<1x1x16x128xf32>
    %1 = vector.shape_cast %0 : vector<1x1x16x128xf32> to vector<16x128xf32>
    %cst = arith.constant 2.990000e-01 : f32
    %2 = vector.broadcast %cst : f32 to vector<16x128xf32>
    %3 = arith.mulf %2, %1 : vector<16x128xf32>
    %c0_3 = arith.constant 0 : index
    %c1 = arith.constant 1 : index
    %c0_4 = arith.constant 0 : index
    %c0_5 = arith.constant 0 : index
    %4 = vector.load %arg2[%c0_3, %c1, %c0_4, %c0_5] : memref<1x3x16x128xf32, #tpu.memory_space<vmem>>, vector<1x1x16x128xf32>
    %5 = vector.shape_cast %4 : vector<1x1x16x128xf32> to vector<16x128xf32>
    %cst_6 = arith.constant 5.870000e-01 : f32
    %6 = vector.broadcast %cst_6 : f32 to vector<16x128xf32>
    %7 = arith.mulf %6, %5 : vector<16x128xf32>
    %8 = arith.addf %3, %7 : vector<16x128xf32>
    %c0_7 = arith.constant 0 : index
    %c2 = arith.constant 2 : index
    %c0_8 = arith.constant 0 : index
    %c0_9 = arith.constant 0 : index
    %9 = vector.load %arg2[%c0_7, %c2, %c0_8, %c0_9] : memref<1x3x16x128xf32, #tpu.memory_space<vmem>>, vector<1x1x16x128xf32>
    %10 = vector.shape_cast %9 : vector<1x1x16x128xf32> to vector<16x128xf32>
    %cst_10 = arith.constant 1.140000e-01 : f32
    %11 = vector.broadcast %cst_10 : f32 to vector<16x128xf32>
    %12 = arith.mulf %11, %10 : vector<16x128xf32>
    %13 = arith.addf %8, %12 : vector<16x128xf32>
    %c0_11 = arith.constant 0 : index
    %c0_12 = arith.constant 0 : index
    %c0_13 = arith.constant 0 : index
    %c0_14 = arith.constant 0 : index
    %14 = vector.load %arg3[%c0_11, %c0_12, %c0_13, %c0_14] : memref<1x1x6x128xf32, #tpu.memory_space<vmem>>, vector<1x1x6x128xf32>
    %15 = vector.shape_cast %14 : vector<1x1x6x128xf32> to vector<6x128xf32>
    %16 = vector.extract_strided_slice %15 {offsets = [0, 0], sizes = [2, 128], strides = [1, 1]} : vector<6x128xf32> to vector<2x128xf32>
    %cst_15 = arith.constant 2.990000e-01 : f32
    %17 = vector.broadcast %cst_15 : f32 to vector<2x128xf32>
    %18 = arith.mulf %17, %16 : vector<2x128xf32>
    %19 = vector.extract_strided_slice %15 {offsets = [2, 0], sizes = [2, 128], strides = [1, 1]} : vector<6x128xf32> to vector<2x128xf32>
    %cst_16 = arith.constant 5.870000e-01 : f32
    %20 = vector.broadcast %cst_16 : f32 to vector<2x128xf32>
    %21 = arith.mulf %20, %19 : vector<2x128xf32>
    %22 = arith.addf %18, %21 : vector<2x128xf32>
    %23 = vector.extract_strided_slice %15 {offsets = [4, 0], sizes = [2, 128], strides = [1, 1]} : vector<6x128xf32> to vector<2x128xf32>
    %cst_17 = arith.constant 1.140000e-01 : f32
    %24 = vector.broadcast %cst_17 : f32 to vector<2x128xf32>
    %25 = arith.mulf %24, %23 : vector<2x128xf32>
    %26 = arith.addf %22, %25 : vector<2x128xf32>
    %27 = tpu.iota {dimensions = array<i32: 1>} : vector<1x128xi32>
    %c0_i32 = arith.constant 0 : i32
    %28 = vector.broadcast %c0_i32 : i32 to vector<1x128xi32>
    %29 = arith.cmpi eq, %27, %28 : vector<1x128xi32>
    %c127_i32 = arith.constant 127 : i32
    %30 = vector.broadcast %c127_i32 : i32 to vector<1x128xi32>
    %31 = arith.cmpi eq, %27, %30 : vector<1x128xi32>
    %c1_i32 = arith.constant 1 : i32
    %32 = tpu.dynamic_rotate %13 by %c1_i32 dim 1 : vector<16x128xf32>, i32 -> vector<16x128xf32>
    %cst_18 = arith.constant 0.000000e+00 : f32
    %33 = vector.shape_cast %29 : vector<1x128xi1> to vector<1x128xi1>
    %34 = vector.broadcast %33 : vector<1x128xi1> to vector<16x128xi1>
    %35 = vector.broadcast %cst_18 : f32 to vector<16x128xf32>
    %36 = arith.select %34, %35, %32 : vector<16x128xi1>, vector<16x128xf32>
    %c127_i32_19 = arith.constant 127 : i32
    %37 = tpu.dynamic_rotate %13 by %c127_i32_19 dim 1 : vector<16x128xf32>, i32 -> vector<16x128xf32>
    %cst_20 = arith.constant 0.000000e+00 : f32
    %38 = vector.shape_cast %31 : vector<1x128xi1> to vector<1x128xi1>
    %39 = vector.broadcast %38 : vector<1x128xi1> to vector<16x128xi1>
    %40 = vector.broadcast %cst_20 : f32 to vector<16x128xf32>
    %41 = arith.select %39, %40, %37 : vector<16x128xi1>, vector<16x128xf32>
    %42 = arith.subf %41, %36 : vector<16x128xf32>
    %cst_21 = arith.constant 2.000000e+00 : f32
    %43 = vector.broadcast %cst_21 : f32 to vector<16x128xf32>
    %44 = arith.mulf %43, %13 : vector<16x128xf32>
    %45 = arith.addf %36, %44 : vector<16x128xf32>
    %46 = arith.addf %45, %41 : vector<16x128xf32>
    %c1_i32_22 = arith.constant 1 : i32
    %47 = tpu.dynamic_rotate %26 by %c1_i32_22 dim 1 : vector<2x128xf32>, i32 -> vector<2x128xf32>
    %cst_23 = arith.constant 0.000000e+00 : f32
    %48 = vector.shape_cast %29 : vector<1x128xi1> to vector<1x128xi1>
    %49 = vector.broadcast %48 : vector<1x128xi1> to vector<2x128xi1>
    %50 = vector.broadcast %cst_23 : f32 to vector<2x128xf32>
    %51 = arith.select %49, %50, %47 : vector<2x128xi1>, vector<2x128xf32>
    %c127_i32_24 = arith.constant 127 : i32
    %52 = tpu.dynamic_rotate %26 by %c127_i32_24 dim 1 : vector<2x128xf32>, i32 -> vector<2x128xf32>
    %cst_25 = arith.constant 0.000000e+00 : f32
    %53 = vector.shape_cast %31 : vector<1x128xi1> to vector<1x128xi1>
    %54 = vector.broadcast %53 : vector<1x128xi1> to vector<2x128xi1>
    %55 = vector.broadcast %cst_25 : f32 to vector<2x128xf32>
    %56 = arith.select %54, %55, %52 : vector<2x128xi1>, vector<2x128xf32>
    %57 = arith.subf %56, %51 : vector<2x128xf32>
    %cst_26 = arith.constant 2.000000e+00 : f32
    %58 = vector.broadcast %cst_26 : f32 to vector<2x128xf32>
    %59 = arith.mulf %58, %26 : vector<2x128xf32>
    %60 = arith.addf %51, %59 : vector<2x128xf32>
    %61 = arith.addf %60, %56 : vector<2x128xf32>
    %62 = tpu.iota {dimensions = array<i32: 0>} : vector<16x1xi32>
    %c0_i32_27 = arith.constant 0 : i32
    %63 = vector.broadcast %c0_i32_27 : i32 to vector<16x1xi32>
    %64 = arith.cmpi eq, %62, %63 : vector<16x1xi32>
    %c15_i32 = arith.constant 15 : i32
    %65 = vector.broadcast %c15_i32 : i32 to vector<16x1xi32>
    %66 = arith.cmpi eq, %62, %65 : vector<16x1xi32>
    %67 = vector.extract_strided_slice %57 {offsets = [0, 0], sizes = [1, 128], strides = [1, 1]} : vector<2x128xf32> to vector<1x128xf32>
    %c1_i32_28 = arith.constant 1 : i32
    %68 = tpu.dynamic_rotate %42 by %c1_i32_28 dim 0 : vector<16x128xf32>, i32 -> vector<16x128xf32>
    %69 = vector.shape_cast %64 : vector<16x1xi1> to vector<16x1xi1>
    %70 = vector.broadcast %69 : vector<16x1xi1> to vector<16x128xi1>
    %71 = vector.shape_cast %67 : vector<1x128xf32> to vector<1x128xf32>
    %72 = vector.broadcast %71 : vector<1x128xf32> to vector<16x128xf32>
    %73 = arith.select %70, %72, %68 : vector<16x128xi1>, vector<16x128xf32>
    %74 = vector.extract_strided_slice %57 {offsets = [1, 0], sizes = [1, 128], strides = [1, 1]} : vector<2x128xf32> to vector<1x128xf32>
    %c15_i32_29 = arith.constant 15 : i32
    %75 = tpu.dynamic_rotate %42 by %c15_i32_29 dim 0 : vector<16x128xf32>, i32 -> vector<16x128xf32>
    %76 = vector.shape_cast %66 : vector<16x1xi1> to vector<16x1xi1>
    %77 = vector.broadcast %76 : vector<16x1xi1> to vector<16x128xi1>
    %78 = vector.shape_cast %74 : vector<1x128xf32> to vector<1x128xf32>
    %79 = vector.broadcast %78 : vector<1x128xf32> to vector<16x128xf32>
    %80 = arith.select %77, %79, %75 : vector<16x128xi1>, vector<16x128xf32>
    %81 = vector.extract_strided_slice %61 {offsets = [0, 0], sizes = [1, 128], strides = [1, 1]} : vector<2x128xf32> to vector<1x128xf32>
    %c1_i32_30 = arith.constant 1 : i32
    %82 = tpu.dynamic_rotate %46 by %c1_i32_30 dim 0 : vector<16x128xf32>, i32 -> vector<16x128xf32>
    %83 = vector.shape_cast %64 : vector<16x1xi1> to vector<16x1xi1>
    %84 = vector.broadcast %83 : vector<16x1xi1> to vector<16x128xi1>
    %85 = vector.shape_cast %81 : vector<1x128xf32> to vector<1x128xf32>
    %86 = vector.broadcast %85 : vector<1x128xf32> to vector<16x128xf32>
    %87 = arith.select %84, %86, %82 : vector<16x128xi1>, vector<16x128xf32>
    %88 = vector.extract_strided_slice %61 {offsets = [1, 0], sizes = [1, 128], strides = [1, 1]} : vector<2x128xf32> to vector<1x128xf32>
    %c15_i32_31 = arith.constant 15 : i32
    %89 = tpu.dynamic_rotate %46 by %c15_i32_31 dim 0 : vector<16x128xf32>, i32 -> vector<16x128xf32>
    %90 = vector.shape_cast %66 : vector<16x1xi1> to vector<16x1xi1>
    %91 = vector.broadcast %90 : vector<16x1xi1> to vector<16x128xi1>
    %92 = vector.shape_cast %88 : vector<1x128xf32> to vector<1x128xf32>
    %93 = vector.broadcast %92 : vector<1x128xf32> to vector<16x128xf32>
    %94 = arith.select %91, %93, %89 : vector<16x128xi1>, vector<16x128xf32>
    %cst_32 = arith.constant 2.000000e+00 : f32
    %95 = vector.broadcast %cst_32 : f32 to vector<16x128xf32>
    %96 = arith.mulf %95, %42 : vector<16x128xf32>
    %97 = arith.addf %73, %96 : vector<16x128xf32>
    %98 = arith.addf %97, %80 : vector<16x128xf32>
    %99 = arith.subf %87, %94 : vector<16x128xf32>
    %100 = math.absf %98 : vector<16x128xf32>
    %101 = math.absf %99 : vector<16x128xf32>
    %102 = arith.addf %100, %101 : vector<16x128xf32>
    %c0_33 = arith.constant 0 : index
    %c0_34 = arith.constant 0 : index
    %c0_35 = arith.constant 0 : index
    %c0_36 = arith.constant 0 : index
    %103 = vector.load %arg4[%c0_33, %c0_34, %c0_35, %c0_36] : memref<1x1x16x128xf32, #tpu.memory_space<vmem>>, vector<1x1x16x128xf32>
    %104 = vector.shape_cast %103 : vector<1x1x16x128xf32> to vector<16x128xf32>
    %105 = vector.shape_cast %102 : vector<16x128xf32> to vector<1x1x16x128xf32>
    tpu.vector_store %arg4[%c0_33, %c0_34, %c0_35, %c0_36], %105 {strides = array<i32>} : memref<1x1x16x128xf32, #tpu.memory_space<vmem>>, vector<1x1x16x128xf32>,
    return
  }
  func.func @transform_0(%arg0: i32, %arg1: i32) -> (i32, i32, i32, i32) {
    %c0_i32 = arith.constant 0 : i32
    %c0_i32_0 = arith.constant 0 : i32
    %c0_i32_1 = arith.constant 0 : i32
    return %arg0, %c0_i32, %arg1, %c0_i32_0 : i32, i32, i32, i32
  }
  func.func @transform_1(%arg0: i32, %arg1: i32) -> (i32, i32, i32, i32) {
    %c0_i32 = arith.constant 0 : i32
    %c0_i32_0 = arith.constant 0 : i32
    %c0_i32_1 = arith.constant 0 : i32
    return %arg0, %arg1, %c0_i32, %c0_i32_0 : i32, i32, i32, i32
  }
  func.func @transform_2(%arg0: i32, %arg1: i32) -> (i32, i32, i32, i32) {
    %c0_i32 = arith.constant 0 : i32
    %c0_i32_0 = arith.constant 0 : i32
    %c0_i32_1 = arith.constant 0 : i32
    return %arg0, %c0_i32, %arg1, %c0_i32_0 : i32, i32, i32, i32
  }
}

</mosaic_0001>

<bundles_post_ra>
// kernel: tpu_custom_call.1
= control target key start
LH: loop header
LB: loop body
LE: loop exit
PB: predicated region body
PF: predicated region fallthrough
CT: control target
= control target key end

     0   :  { %7 = vsyncpa [#allocation3], 0  ;;  %s943_s0 = inlined_call_operand.hbm [shape: f32[2,3,64,128], index: 0, kind: input, shape index: {}]   ;;  %s944_s1 = inlined_call_operand.vmem [shape: f32[2,4,6,128], index: 1, kind: input, shape index: {}]   ;;  %s945_s2 = inlined_call_operand.hbm [shape: f32[2,1,64,128], index: 2, kind: output, shape index: {}]  }
   0x1   :  { %9 = vsyncpa [#allocation3 + $0x1], 0 }
   0x2   :  { %10 = vsyncpa [#allocation4], 0 }
   0x3   :  { %12 = vsyncpa [#allocation4 + $0x1], 0  ;;  %s744_s9 = smov 0   ;;  %s746_s10 = smov 0  }
   0x4   :  { %s748_s11 = smov 0   ;;  %s750_s12 = smov 0  }
   0x5   :  { %s752_s13 = smov 0   ;;  %s754_s14 = smov 0  }
   0x6   :  { %s756_s15 = smov 0   ;;  %s758_s16 = smov 0  }
   0x7 LB: > { %s503_s17 = sadd.s32 4294967295, %s716_s16   ;;  %s504_s18 = sadd.s32 4294967294, %s716_s16   ;;  %s716_s16 = sphi %s758_s16, %s18_s16   ;;  %s712_s15 = sphi %s756_s15, %s962_s15   ;;  %s708_s14 = sphi %s754_s14, %s961_s14   ;;  %s704_s13 = sphi %s752_s13, %s960_s13   ;;  %s700_s12 = sphi %s750_s12, %s959_s12   ;;  %s696_s11 = sphi %s748_s11, %s958_s11   ;;  %s692_s10 = sphi %s746_s10, %s957_s10   ;;  %s688_s9 = sphi %s744_s9, %s956_s9  }
   0x8   : > { %s27_s19 = sadd.s32 1, %s708_s14  ;;  %s30_s20 = sadd.s32 1, %s712_s15 }
   0x9   : > { %p28_p0 = scmp.ge.s32.totalorder %s27_s19, 4  ;;  %p46_p1 = scmp.ne.s32.totalorder %s696_s11, %s692_s10 }
   0xa   : > { %p47_p2 = scmp.eq.s32.totalorder %s716_s16, 0  ;;  %p52_p5 = scmp.ne.s32.totalorder %s692_s10, %s688_s9 }
   0xb   : > { %s964_s19 = smov (%p28_p0, %s27_s19), 0  ;;  %s966_s20 = smov (!%p28_p0, %s30_s20), %s712_s15 }
   0xc   : > { %948 = sst [smem:[#allocation11_spill]] %s964_s19  ;;  %s35_s21 = ssub.s32 %s708_s14, %s964_s19 }
   0xd   : > { %p796_p3 = por %p47_p2, %p46_p1  ;;  %p32_p4 = scmp.ge.s32.totalorder %s966_s20, 2 }
   0xe   : > { %p53_p6 = scmp.eq.s32.totalorder %s503_s17, 0  ;;  %p106_p7 = scmp.eq.s32.totalorder %s503_s17, 7 }
   0xf   : > { %s968_s20 = smov (%p32_p4, %s966_s20), 0  ;;  %p112_p10 = scmp.eq.s32.totalorder %s504_s18, 7 }
  0x10   : > { %950 = sst [smem:[#allocation12_spill]] %s968_s20  ;;  %p804_p8 = por %p53_p6, %p52_p5 }
  0x11   : > { %p808_p9 = por %p106_p7, %p46_p1  ;;  %s34_s25 = ssub.s32 %s712_s15, %s968_s20 }
  0x12   : > { %s36_s26 = sor.u32 %s35_s21, %s34_s25  ;;  %s39_s27 = sadd.s32 1, %s696_s11 }
  0x13   : > { %p37_p11 = scmp.eq.s32.totalorder %s36_s26, 0  ;;  %p815_p12 = por %p112_p10, %p52_p5 }
  0x14   : > { %p506_p13 = scmp.ge.s32.totalorder %s716_s16, 8 }
  0x15   : > { %s820_s29 = scalar_select %p37_p11, %s696_s11, %s39_s27  }
  0x16   : > { %128 = sbr.rel (%p506_p13) target bundleno = 45 (0x2d), region = 16 }
  0x1d   : > { %s132_s30 = sand.u32 1, %s696_s11   ;;  %s507_s4 = sshll.u32 %s708_s14, 1 }
  0x1e   : > { %s525_s3 = smul.u32 48, %s132_s30  ;;  %s718_s6 = smov 1024  }
  0x1f   : > { %s526_s5 = smul.u32 24, %s712_s15  ;;  %529 = sst [smem:[#allocation7]] (%p796_p3), %s718_s6 }
  0x20   : > { %s136_s8 = scalar_lea.vmem [#allocation2], %s525_s3  ;;  %s719_s21 = smov 256  }
  0x21   : > { %s142_s7 = sadd.s32 %s526_s5, %s507_s4  ;;  %s157_s17 = sshll.u32 %s136_s8, 4  ;;  %s158_s17 = int_to_ptr.vmem [resolvable:$true] %s157_s17 }
  0x22   : > { %s528_s18 = scalar_select %p796_p3, [#allocation0], [#allocation8] }
  0x23   : > { %530 = sst [smem:[#allocation7 + $0x1]] (%p796_p3), %s719_s21  ;;  %s720_s26 = smov 2  }
  0x24   : > { %s149_s25 = sld [smem:[%s528_s18]]   ;;  %s508_s27 = sshll.u32 %s142_s7, 7 }
  0x25   : > { %531 = sst [smem:[#allocation7 + $0x2]] (%p796_p3), %s720_s26  ;;  %s721_s20 = smov 128  }
  0x26   : > { %532 = sst [smem:[#allocation7 + $0x3]] (%p796_p3), %s721_s20  ;;  %s722_s4 = smov 8  }
  0x27   : > { %533 = sst [smem:[#allocation7 + $0x4]] (%p796_p3), %s721_s20  ;;  %s144_s6 = scalar_lea.hbm %s943_s0, %s508_s27 }
  0x28   : > { %534 = sst [smem:[#allocation7 + $0x5]] (%p796_p3), %s722_s4  ;;  %s133_s18 = scalar_lea.sflag [#allocation3], %s132_s30 }
  0x29   : > { %s723_s19 = smov [#allocation6]  }
  0x2a   : > { %s509_s8 = sshll.u32 %s149_s25, 26 }
  0x2b   : > { %s510_s21 = sadd.s32 134217728, %s509_s8 }
  0x2c   : > { %535 = dma.general (%p796_p3), %s144_s6, 768, %s158_s17, %s133_s18, %s723_s19, [#allocation7], %s510_s21, 0  }
  0x2d PF: > { %p511_p0 = scmp.ge.s32.totalorder %s716_s16, 1  ;;  %p189_p1 = scmp.lt.s32.totalorder %s716_s16, 9 }
  0x2f   : > { %p190_p2 = pnand %p511_p0, %p189_p1 }
  0x30   : > { %s848_s20 = sand.u32 (!%p190_p2), 1, %s692_s10  }
  0x31   : > { %193 = sbr.rel (%p190_p2) target bundleno = 219 (0xdb), region = 28  ;;  %s196_s25 = scalar_lea.sflag (!%p190_p2), [#allocation3], %s848_s20 }
  0x32   : > { %s527_s7 = smul.u32 (!%p190_p2), 48, %s848_s20 }
  0x34   : > { %s199_s26 = scalar_lea.vmem (!%p190_p2), [#allocation2], %s527_s7 }
  0x38   : > { %679 = dma.done.wait (%p804_p8), %s196_s25, 768  }
  0x39   : > { %681 = vsyncadd (%p804_p8), %s196_s25, 4294966528  ;;  %p229_p3 = scmp.lt.s32.totalorder %s704_s13, 1  ;;  %p231_p4 = scmp.lt.s32.totalorder %s700_s12, 3  ;;  %v238_v0 = vld [vmem:[%s199_s26] sm:$0xff]  ;;  %v515_v1 = vld [vmem:[%s199_s26 + $0x10] sm:$0xff]  ;;  %v268_v24 = vlaneseq }
  0x3a   : > { %v517_v2 = vld [vmem:[%s199_s26 + $0x20] sm:$0xff]  ;;  %v240_v3 = vmul.f32 0.299, %v238_v0  ;;  %v245_v4 = vmul.f32 0.587, %v515_v1  ;;  %v239_v6 = vld [vmem:[%s199_s26 + $0x8] sm:$0xff] }
  0x3b   : > { %s230_s19 = scalar_select %p229_p3, %s704_s13, 1  ;;  %v252_v5 = vmul.f32 0.114, %v517_v2  ;;  %v516_v7 = vld [vmem:[%s199_s26 + $0x18] sm:$0xff]  ;;  %v518_v8 = vld [vmem:[%s199_s26 + $0x28] sm:$0xff]  ;;  %v269_v25 = vand.u32 127, %v268_v24 }
  0x3c   : > { %s232_s22 = scalar_select %p231_p4, %s700_s12, 3  ;;  %v247_v9 = vadd.f32 %v245_v4, %v240_v3  ;;  %v241_v10 = vmul.f32 0.299, %v239_v6  ;;  %v246_v11 = vmul.f32 0.587, %v516_v7  ;;  %v307_v30 = vshrl.u32 %v268_v24, 7 }
  0x3d   : > { %s513_s30 = sshll.u32 %s230_s19, 2  ;;  %v253_v12 = vmul.f32 0.114, %v518_v8  ;;  %s724_s5 = smov 127   ;;  %vm270_vm0 = vcmp.eq.s32.totalorder %v269_v25, 0  ;;  %vm271_vm1 = vcmp.eq.s32.totalorder %v269_v25, 127 }
  0x3e   : > { %s234_s17 = sadd.s32 %s513_s30, %s232_s22  ;;  %v254_v14 = vadd.f32 %v252_v5, %v247_v9  ;;  %v248_v15 = vadd.f32 %v246_v11, %v241_v10  ;;  %s725_s6 = smov 1   ;;  %v308_v36 = vadd.s32 8, %v307_v30  ;;  %vm315_vm2 = vcmp.lt.s32.totalorder %v307_v30, 1 }
  0x3f   : > { %s514_s27 = sshll.u32 %s234_s17, 3  ;;  %vm330_vm3 = vcmp.lt.s32.totalorder %v307_v30, 7  ;;  %v324_v43 = vsub.s32 0, %v307_v30  ;;  %v339_v44 = vsub.s32 1, %v307_v30  ;;  %vm309_vm4 = vcmp.eq.s32.totalorder %v307_v30, 0  ;;  %s512_s8 = sshll.u32 %s848_s20, 4 }
  0x40   : > { %s236_s3 = scalar_lea.vmem %s944_s1, %s514_s27  ;;  %280 = vrot.lane.b32.xlu1 %v254_v14, %s724_s5  ;;  %272 = vrot.lane.b32.xlu0 %v254_v14, %s725_s6  ;;  %v255_v19 = vadd.f32 %v253_v12, %v248_v15  ;;  %v290_v26 = vmul.f32 2.0, %v254_v14  ;;  %vm312_vm5 = vcmp.eq.s32.totalorder %v308_v36, 15  ;;  %s520_s21 = sshll.u32 %s700_s12, 1 }
  0x41   : > { %v256_v13 = vld [vmem:[%s236_s3] sm:$0x3f]  ;;  %s521_s18 = sshll.u32 %s704_s13, 3  ;;  %s227_s13 = scalar_lea.vmem [#allocation5], %s512_s8 }
  0x42   : > { %v257_v16 = vmul.f32 0.299, %v256_v13  ;;  %v258_v17 = vmul.f32 0.587, %v256_v13  ;;  %v263_v18 = vmul.f32 0.114, %v256_v13  ;;  %s392_s7 = sadd.s32 %s521_s18, %s520_s21 }
  0x43   : > { %v291_v32 = vmul.f32 2.0, %v255_v19  ;;  %s522_s12 = sshll.u32 %s392_s7, 7  ;;  %s395_s25 = sshll.u32 %s227_s13, 4  ;;  %s889_s25 = int_to_ptr.vmem [resolvable:$true] %s395_s25 }
  0x44   : > { %v260_v20 = vrot.slane %v258_v17, 2  ;;  %v265_v21 = vrot.slane %v263_v18, 4  ;;  %282 = vrot.lane.b32.xlu1 %v255_v19, %s724_s5  ;;  %274 = vrot.lane.b32.xlu0 %v255_v19, %s725_s6  ;;  %s887_s22 = scalar_lea.hbm %s945_s2, %s522_s12  ;;  %s380_s30 = scalar_lea.sflag [#allocation4], %s848_s20 }
  0x45   : > { %s618_s17 = scalar_lea.vmem %s889_s25, 256  ;;  %s726_s27 = smov [#allocation5]  }
  0x46   : > { %v262_v22 = vadd.f32 %v260_v20, %v257_v16  ;;  %p619_p5 = scmp.ne.s32.totalorder %s889_s25, %s618_s17  ;;  %s622_s4 = sshll.u32 %s726_s27, 4  ;;  %s623_s4 = int_to_ptr.vmem [resolvable:$false] %s622_s4 }
  0x47   : > { %s624_s23 = scalar_lea.vmem %s623_s4, 512  ;;  %p625_p8 = scmp.lt.s32.totalorder %s889_s25, %s623_s4 }
  0x48   : > { %v267_v23 = vadd.f32 %v265_v21, %v262_v22  ;;  %p620_p6 = pnand %p619_p5, %p808_p9  ;;  %p626_p10 = scmp.lt.s32.totalorder %s624_s23, %s618_s17 }
  0x4a   : > { %299 = vrot.lane.b32.xlu1 %v267_v23, %s724_s5  ;;  %296 = vrot.lane.b32.xlu0 %v267_v23, %s725_s6  ;;  %v303_v47 = vmul.f32 2.0, %v267_v23  ;;  %p621_p7 = pneg %p620_p6  ;;  %p627_p11 = por %p626_p10, %p625_p8 }
  0x4c   : > { %p628_p13 = pnand %p627_p11, %p621_p7 }
  0xb2   : > { %v281_v27 = vpop.permute.xlu1 %280  ;;  %v273_v28 = vpop.permute.xlu0 %272 }
  0xb3   : > { %v278_v29 = vsel %vm270_vm0, 0.0, %v273_v28  ;;  %v286_v33 = vsel %vm271_vm1, 0.0, %v281_v27 }
  0xb4   : > { %v292_v31 = vadd.f32 %v290_v26, %v278_v29  ;;  %v288_v42 = vsub.f32 %v286_v33, %v278_v29 }
  0xb6   : > { %v283_v34 = vpop.permute.xlu1 %282  ;;  %v275_v35 = vpop.permute.xlu0 %274  ;;  %v294_v37 = vadd.f32 %v292_v31, %v286_v33  ;;  %v313_v57 = vrot.slane %v288_v42, 7  ;;  %v328_v58 = vrot.slane %v288_v42, 1  ;;  %v363_v5 = vmul.f32 2.0, %v288_v42 }
  0xb7   : > { %v287_v38 = vsel %vm271_vm1, 0.0, %v283_v34  ;;  %v279_v39 = vsel %vm270_vm0, 0.0, %v275_v35 }
  0xb8   : > { %v289_v40 = vsub.f32 %v287_v38, %v279_v39  ;;  %v293_v41 = vadd.f32 %v291_v32, %v279_v39  ;;  %v343_v49 = vrot.slane %v294_v37, 7  ;;  %v353_v53 = vrot.slane %v294_v37, 1 }
  0xba   : > { %v295_v45 = vadd.f32 %v293_v41, %v287_v38  ;;  %v314_v50 = vrot.slane %v289_v40, 7  ;;  %v329_v54 = vrot.slane %v289_v40, 1  ;;  %v364_v59 = vmul.f32 2.0, %v289_v40 }
  0xbc   : > { %v300_v46 = vpop.permute.xlu1 %299  ;;  %v297_v48 = vpop.permute.xlu0 %296  ;;  %v344_v55 = vrot.slane %v295_v45, 7  ;;  %v354_v56 = vrot.slane %v295_v45, 1  ;;  %v316_v1 = vsel %vm315_vm2, %v313_v57, %v314_v50  ;;  %v317_v6 = vsel %vm315_vm2, %v314_v50, %v313_v57 }
  0xbd   : > { %v301_v51 = vsel %vm271_vm1, 0.0, %v300_v46  ;;  %v298_v52 = vsel %vm270_vm0, 0.0, %v297_v48  ;;  %v332_v7 = vsel %vm330_vm3, %v329_v54, %v328_v58  ;;  %v366_v11 = vadd.f32 %v364_v59, %v316_v1 }
  0xbe   : > { %v302_v60 = vsub.f32 %v301_v51, %v298_v52  ;;  %v345_v61 = vsel %vm315_vm2, %v343_v49, %v344_v55  ;;  %v346_v62 = vsel %vm315_vm2, %v344_v55, %v343_v49  ;;  %v355_v63 = vsel %vm330_vm3, %v353_v53, %v354_v56 }
  0xbf   : > { %v356_v0 = vsel %vm330_vm3, %v354_v56, %v353_v53  ;;  %v304_v2 = vadd.f32 %v303_v47, %v298_v52  ;;  %v331_v13 = vsel %vm330_vm3, %v328_v58, %v329_v54 }
  0xc0   : > { %v325_v3 = vrot.slane %v302_v60, %v324_v43  ;;  %v340_v4 = vrot.slane %v302_v60, %v339_v44 }
  0xc1   : > { %v305_v8 = vadd.f32 %v304_v2, %v301_v51 }
  0xc2   : > { %v326_v9 = vsel %vm309_vm4, %v325_v3, %v317_v6  ;;  %v342_v10 = vsel %vm312_vm5, %v340_v4, %v332_v7 }
  0xc3   : > { %v365_v12 = vadd.f32 %v363_v5, %v326_v9  ;;  %v350_v14 = vrot.slane %v305_v8, %v324_v43  ;;  %v360_v15 = vrot.slane %v305_v8, %v339_v44  ;;  %v368_v17 = vadd.f32 %v366_v11, %v342_v10 }
  0xc5   : > { %v367_v16 = vadd.f32 %v365_v12, %v331_v13  ;;  %v351_v18 = vsel %vm309_vm4, %v350_v14, %v346_v62  ;;  %v362_v19 = vsel %vm312_vm5, %v360_v15, %v356_v0  ;;  %v372_v23 = vand.u32 2147483647, %v368_v17 }
  0xc6   : > { %v369_v20 = vsub.f32 %v351_v18, %v355_v63  ;;  %v370_v21 = vsub.f32 %v345_v61, %v362_v19 }
  0xc7   : > { %v371_v22 = vand.u32 2147483647, %v367_v16 }
  0xc8   : > { %v373_v24 = vand.u32 2147483647, %v369_v20  ;;  %v374_v25 = vand.u32 2147483647, %v370_v21 }
  0xca   : > { %v375_v26 = vadd.f32 %v373_v24, %v371_v22  ;;  %v376_v27 = vadd.f32 %v374_v25, %v372_v23 }
  0xcc   : > { %377 = vst [vmem:[%s227_s13] sm:$0xff] %v375_v26  ;;  %378 = vst [vmem:[%s227_s13 + $0x8] sm:$0xff] %v376_v27 }
  0xcd   : > { %631 = shalt.err (!%p628_p13)
}
  0xce   : > { %s632_s3 = scalar_lea.hbm %s887_s22, 256  ;;  %s636_s8 = scalar_lea.hbm %s945_s2, 2048 }
  0xcf   : > { %p633_p0 = scmp.ne.s32.totalorder %s887_s22, %s632_s3  ;;  %p637_p3 = scmp.lt.u32.totalorder %s887_s22, %s945_s2 }
  0xd0   : > { %p638_p4 = scmp.lt.u32.totalorder %s636_s8, %s632_s3  ;;  %p640_p6 = scmp.lt.u32.totalorder %s632_s3, %s887_s22 }
  0xd1   : > { %p634_p1 = pnand %p633_p0, %p808_p9 }
  0xd2   : > { %p639_p5 = por %p638_p4, %p637_p3 }
  0xd3   : > { %p635_p2 = pneg %p634_p1 }
  0xd4   : > { %p641_p7 = por %p640_p6, %p639_p5 }
  0xd6   : > { %p642_p8 = pnand %p641_p7, %p635_p2 }
  0xd8   : > { %645 = shalt.err (!%p642_p8)
}
  0xd9   : > { %s727_s7 = smov 128   ;;  %s728_s12 = smov 8  }
  0xda   : > { %537 = dma.vmem_to_hbm [thread:$0]  (%p808_p9), %s889_s25, 256, %s887_s22, %s380_s30, %s727_s7, %s727_s7, %s728_s12  }
  0xdb PF: > { %p543_p10 = scmp.ge.s32.totalorder %s716_s16, 2  ;;  %s410_s13 = sand.u32 1, %s688_s9  }
  0xdc   : > { %s411_s26 = scalar_lea.sflag [#allocation4], %s410_s13 }
  0xdd   : > { %p540_p11 = pnand %p543_p10, %p815_p12 }
  0xdf   : > { %683 = dma.done.wait (!%p540_p11), %s411_s26, 256  }
  0xe0   : > { %685 = vsyncadd (!%p540_p11), %s411_s26, 4294967040  ;;  %s18_s16 = sadd.s32 1, %s716_s16   ;;  %s954_s24 = sld [smem:[#allocation11_spill]] }
  0xe1   : > { %p15_p13 = scmp.ge.s32.totalorder %s18_s16, 10   ;;  %s955_s20 = sld [smem:[#allocation12_spill]] }
  0xe2   : > { %s956_s9 = smov %s692_s10  ;;  %s957_s10 = smov %s696_s11 }
  0xe3   : > { %s958_s11 = smov %s820_s29  ;;  %s959_s12 = smov %s708_s14 }
  0xe4   : > { %s960_s13 = smov %s712_s15  ;;  %17 = sbr.rel (!%p15_p13) target bundleno = 7 (0x7), region = 83 }
  0xe6   : > { %s961_s14 = smov %s954_s24 }
  0xe7   : > { %s962_s15 = smov %s955_s20 }
  0xeb   :  { %416 = vsyncpa [#allocation3], 1 }
  0xec   :  { %418 = vsyncpa [#allocation3 + $0x1], 1 }
  0xed   :  { %419 = vsyncpa [#allocation4], 1 }
  0xee   :  { %421 = vsyncpa [#allocation4 + $0x1], 1 }

</bundles_post_ra>
